<compile_context>
chip_gen: v6e
topology: v6e:2x2x1
jax: 0.10.0
libtpu: 0.0.40
codegen_flags: <defaults>
</compile_context>

<pallas_src>
import functools
import math

import jax
import jax.numpy as jnp
from jax import lax
from jax.experimental import pallas as pl
from jax.experimental.pallas import tpu as pltpu


_HALF_LOG_2PI = 0.5 * math.log(2.0 * math.pi)
_LANE = 128


def _round_up(x, m):
    return ((x + m - 1) // m) * m


def _default_batch_block():
    """Per-generation default batch tile (v7x has half the VMEM of v5e/v6e)."""
    try:
        vmem = pltpu.get_tpu_info().vmem_capacity_bytes
    except Exception:
        vmem = 128 * 1024 * 1024
    return 512 if vmem <= 64 * 1024 * 1024 else 1024


def _actor_kernel(*refs, max_action, compute_dtype, action_dim,
                  has_eps, need_log_prob):
    """Full Actor forward for one batch tile (single fused grid step)."""
    idx = 0
    state_ref = refs[idx]; idx += 1
    eps_ref = None
    if has_eps:
        eps_ref = refs[idx]; idx += 1
    (w1_ref, b1_ref, w2_ref, b2_ref,
     w3_ref, b3_ref, wh_ref, bh_ref) = refs[idx:idx + 8]
    out_ref = refs[idx + 8]

    cdt = compute_dtype
    pad = wh_ref.shape[1] // 2          # lane-padded per-head width (>= A+1)

    # In-kernel cast of the activations (VPU filler under free slots).
    x = state_ref[...].astype(cdt)

    # Trunk: 3 x (Linear + ReLU); MXU dots accumulate in f32, bias/ReLU in f32.
    h = jnp.dot(x, w1_ref[...], preferred_element_type=jnp.float32) + b1_ref[...]
    h = jnp.maximum(h, 0.0).astype(cdt)
    h = jnp.dot(h, w2_ref[...], preferred_element_type=jnp.float32) + b2_ref[...]
    h = jnp.maximum(h, 0.0).astype(cdt)
    h = jnp.dot(h, w3_ref[...], preferred_element_type=jnp.float32) + b3_ref[...]
    h = jnp.maximum(h, 0.0).astype(cdt)

    # Packed heads: one (H, 2*pad) matmul.  mu = lanes [0,pad),
    # log_sigma = lanes [pad, 2*pad); padded columns are exactly zero.
    head = jnp.dot(h, wh_ref[...], preferred_element_type=jnp.float32) + bh_ref[...]
    mu = head[:, :pad]
    log_sigma = jnp.clip(head[:, pad:], -5.0, 2.0)

    if has_eps:
        eps = eps_ref[...]                       # (bt, pad), zero-padded lanes
        action = mu + jnp.exp(log_sigma) * eps   # rsample
    else:
        action = mu                              # deterministic

    tanh_a = jnp.tanh(action)
    act_scaled = tanh_a * max_action             # padded lanes are exactly 0

    if need_log_prob:
        # Normal(mu, sigma).log_prob(action) with action = mu + sigma*eps:
        #   -0.5*eps^2 - log_sigma - 0.5*log(2*pi)   (eps == 0 if deterministic)
        gauss = -log_sigma - _HALF_LOG_2PI
        if has_eps:
            gauss = gauss - 0.5 * (eps * eps)
        # Fused single cross-lane reduction (tanh correction folded in).
        lp_terms = gauss - jnp.log(1.0 - tanh_a * tanh_a + 1e-6)
        lane = lax.broadcasted_iota(jnp.int32, lp_terms.shape, 1)
        valid = lane < action_dim
        lp = jnp.sum(jnp.where(valid, lp_terms, 0.0), axis=-1, keepdims=True)
        # Lane-dense combined store: action in lanes [0,A), log-prob elsewhere.
        out = jnp.where(valid, act_scaled, jnp.broadcast_to(lp, act_scaled.shape))
        out_ref[...] = out.astype(out_ref.dtype)
    else:
        out_ref[...] = act_scaled.astype(out_ref.dtype)


def pack_params(params, *, compute_dtype=jnp.bfloat16):
    """One-time param prep: cast weights to the matmul dtype and pack the two
    heads into a single lane-aligned (H, 2*pad) weight / (1, 2*pad) bias."""
    (w1, b1), (w2, b2), (w3, b3), (w_mu, b_mu), (w_ls, b_ls) = params
    S, H = w1.shape
    A = w_mu.shape[1]
    pad = _round_up(A + 1, _LANE)   # >= A+1 so the log-prob has a spare lane

    wh = jnp.zeros((H, 2 * pad), jnp.float32)
    wh = wh.at[:, :A].set(w_mu).at[:, pad:pad + A].set(w_ls)
    bh = jnp.zeros((1, 2 * pad), jnp.float32)
    bh = bh.at[:, :A].set(jnp.reshape(b_mu, (1, A)))
    bh = bh.at[:, pad:pad + A].set(jnp.reshape(b_ls, (1, A)))

    cdt = jnp.dtype(compute_dtype)
    return dict(
        w1=w1.astype(cdt), b1=jnp.reshape(b1, (1, H)).astype(jnp.float32),
        w2=w2.astype(cdt), b2=jnp.reshape(b2, (1, H)).astype(jnp.float32),
        w3=w3.astype(cdt), b3=jnp.reshape(b3, (1, H)).astype(jnp.float32),
        wh=wh.astype(cdt), bh=bh,
        state_dim=S, hidden_dim=H, action_dim=A, pad=pad,
        compute_dtype=cdt,
    )


def actor_forward(state, packed, *, eps=None, deterministic=False,
                  need_log_prob=False, max_action=1.0,
                  batch_block=None, vmem_limit_bytes=None):
    """Pallas implementation of Actor.forward.

    state: (B, state_dim) f32.  Returns (tanh_action * max_action, log_prob)
    with log_prob of shape (B,) if need_log_prob else None.  Gaussian noise is
    supplied explicitly via `eps` (ignored when deterministic); no eps ==
    zero noise.
    """
    B, S = state.shape
    assert S == packed["state_dim"]
    A = packed["action_dim"]
    pad = packed["pad"]
    H = packed["hidden_dim"]
    cdt = packed["compute_dtype"]

    has_eps = (not deterministic) and (eps is not None)

    # --- batch tiling: fat tiles + padded grid (never one giant ragged tile)
    if batch_block is None:
        batch_block = _default_batch_block()
    batch_block = max(8, _round_up(int(batch_block), 8))
    bt = _round_up(B, 8) if B <= batch_block else batch_block
    B_pad = _round_up(B, bt)
    grid = (B_pad // bt,)

    state_p = state.astype(jnp.float32)
    if B_pad != B:
        state_p = jnp.pad(state_p, ((0, B_pad - B), (0, 0)))

    args = [state_p]
    in_specs = [pl.BlockSpec((bt, S), lambda i: (i, 0))]
    if has_eps:
        eps_p = jnp.zeros((B_pad, pad), jnp.float32).at[:B, :A].set(
            eps.astype(jnp.float32))
        args.append(eps_p)
        in_specs.append(pl.BlockSpec((bt, pad), lambda i: (i, 0)))

    def full(shape):
        return pl.BlockSpec(shape, lambda i: (0, 0))

    in_specs += [full((S, H)), full((1, H)),
                 full((H, H)), full((1, H)),
                 full((H, H)), full((1, H)),
                 full((H, 2 * pad)), full((1, 2 * pad))]
    args += [packed["w1"], packed["b1"], packed["w2"], packed["b2"],
             packed["w3"], packed["b3"], packed["wh"], packed["bh"]]

    out_specs = pl.BlockSpec((bt, pad), lambda i: (i, 0))
    out_shape = jax.ShapeDtypeStruct((B_pad, pad), jnp.float32)

    if vmem_limit_bytes is None:
        itemsize = jnp.dtype(cdt).itemsize
        weight_b = (S * H + 2 * H * H + H * 2 * pad) * itemsize + (3 * H + 2 * pad) * 4
        tile_b = 2 * bt * (S + 2 * pad) * 4          # double-buffered in/out tiles
        scratch_b = 8 * bt * max(H, 2 * pad) * 4     # activation temporaries
        vmem_limit_bytes = min(64 * 1024 * 1024,
                               max(32 * 1024 * 1024,
                                   2 * (weight_b + tile_b + scratch_b)))

    kernel = functools.partial(
        _actor_kernel, max_action=float(max_action), compute_dtype=cdt,
        action_dim=A, has_eps=has_eps, need_log_prob=need_log_prob)

    out = pl.pallas_call(
        kernel,
        out_shape=out_shape,
        grid_spec=pltpu.PrefetchScalarGridSpec(
            num_scalar_prefetch=0,
            grid=grid,
            in_specs=in_specs,
            out_specs=out_specs),
        compiler_params=pltpu.CompilerParams(
            dimension_semantics=("parallel",),
            vmem_limit_bytes=int(vmem_limit_bytes)),
    )(*args)

    action = out[:B, :A]
    log_prob = out[:B, A] if need_log_prob else None
    return action, log_prob


def init_params(key, state_dim, action_dim, hidden_dim):
    """Mirror the PyTorch Actor init.  Weights stored as (in, out)."""
    def linear_w(k, fan_in, fan_out, bound=None):
        if bound is None:
            bound = 1.0 / math.sqrt(fan_in)   # kaiming_uniform_(a=sqrt(5))
        return jax.random.uniform(k, (fan_in, fan_out), jnp.float32, -bound, bound)

    ks = jax.random.split(key, 7)
    w1 = linear_w(ks[0], state_dim, hidden_dim)
    w2 = linear_w(ks[1], hidden_dim, hidden_dim)
    w3 = linear_w(ks[2], hidden_dim, hidden_dim)
    # trunk biases: torch.nn.init.constant_(layer.bias, 0.1)
    b1 = jnp.full((1, hidden_dim), 0.1, jnp.float32)
    b2 = jnp.full((1, hidden_dim), 0.1, jnp.float32)
    b3 = jnp.full((1, hidden_dim), 0.1, jnp.float32)
    # mu / log_sigma heads: uniform(-1e-3, 1e-3) for weight and bias
    w_mu = linear_w(ks[3], hidden_dim, action_dim, bound=1e-3)
    b_mu = jax.random.uniform(ks[4], (1, action_dim), jnp.float32, -1e-3, 1e-3)
    w_ls = linear_w(ks[5], hidden_dim, action_dim, bound=1e-3)
    b_ls = jax.random.uniform(ks[6], (1, action_dim), jnp.float32, -1e-3, 1e-3)
    return (w1, b1), (w2, b2), (w3, b3), (w_mu, b_mu), (w_ls, b_ls)


def reference_forward(state, params, eps, max_action=1.0):
    """Pure-JAX f32 reference mirroring Actor.forward with explicit noise."""
    (w1, b1), (w2, b2), (w3, b3), (w_mu, b_mu), (w_ls, b_ls) = params
    hi = jax.lax.Precision.HIGHEST
    h = jax.nn.relu(jnp.dot(state, w1, precision=hi) + b1)
    h = jax.nn.relu(jnp.dot(h, w2, precision=hi) + b2)
    h = jax.nn.relu(jnp.dot(h, w3, precision=hi) + b3)
    mu = jnp.dot(h, w_mu, precision=hi) + b_mu
    log_sigma = jnp.clip(jnp.dot(h, w_ls, precision=hi) + b_ls, -5.0, 2.0)
    sigma = jnp.exp(log_sigma)
    action = mu + sigma * eps
    tanh_a = jnp.tanh(action)
    log_prob = (-((action - mu) ** 2) / (2.0 * sigma ** 2)
                - log_sigma - _HALF_LOG_2PI).sum(-1)
    log_prob = log_prob - jnp.log(1.0 - tanh_a ** 2 + 1e-6).sum(-1)
    return tanh_a * max_action, log_prob


if __name__ == "__main__":
    state_dim, action_dim, hidden_dim = 12, 6, 32
    batch = 8
    max_action = 1.0

    key = jax.random.PRNGKey(0)
    k_params, k_state, k_eps = jax.random.split(key, 3)

    params = init_params(k_params, state_dim, action_dim, hidden_dim)
    state = jax.random.normal(k_state, (batch, state_dim), jnp.float32)
    eps = jax.random.normal(k_eps, (batch, action_dim), jnp.float32)

    a_ref, lp_ref = reference_forward(state, params, eps, max_action)

    # 1) f32 compute path: structural check against the reference.
    pk32 = pack_params(params, compute_dtype=jnp.float32)
    a32, lp32 = actor_forward(state, pk32, eps=eps, need_log_prob=True,
                              max_action=max_action)
    jax.block_until_ready((a32, lp32))
    assert a32.shape == (batch, action_dim), a32.shape
    assert lp32.shape == (batch,), lp32.shape
    assert jnp.allclose(a32, a_ref, atol=1e-3, rtol=1e-3), (
        float(jnp.max(jnp.abs(a32 - a_ref))))
    assert jnp.allclose(lp32, lp_ref, atol=1e-2, rtol=1e-3), (
        float(jnp.max(jnp.abs(lp32 - lp_ref))))

    # 2) bf16 compute path (production config): f32 accumulation, looser tol.
    pkbf = pack_params(params, compute_dtype=jnp.bfloat16)
    abf, lpbf = actor_forward(state, pkbf, eps=eps, need_log_prob=True,
                              max_action=max_action)
    jax.block_until_ready((abf, lpbf))
    assert jnp.allclose(abf, a_ref, atol=5e-2, rtol=5e-2), (
        float(jnp.max(jnp.abs(abf - a_ref))))
    assert jnp.allclose(lpbf, lp_ref, atol=5e-1, rtol=5e-2), (
        float(jnp.max(jnp.abs(lpbf - lp_ref))))

    # 3) deterministic inference path: no eps input stream, no log-prob.
    a_det, lp_det = actor_forward(state, pk32, deterministic=True,
                                  max_action=max_action)
    a_det_ref, _ = reference_forward(
        state, params, jnp.zeros((batch, action_dim), jnp.float32), max_action)
    jax.block_until_ready(a_det)
    assert lp_det is None
    assert jnp.allclose(a_det, a_det_ref, atol=1e-3, rtol=1e-3), (
        float(jnp.max(jnp.abs(a_det - a_det_ref))))

    # 4) ragged batch exercising the padded multi-tile grid (>1 grid step).
    B2 = 20
    state2 = jax.random.normal(jax.random.PRNGKey(1), (B2, state_dim), jnp.float32)
    eps2 = jax.random.normal(jax.random.PRNGKey(2), (B2, action_dim), jnp.float32)
    a2_ref, lp2_ref = reference_forward(state2, params, eps2, max_action)
    a2, lp2 = actor_forward(state2, pk32, eps=eps2, need_log_prob=True,
                            max_action=max_action, batch_block=8)
    jax.block_until_ready((a2, lp2))
    assert a2.shape == (B2, action_dim), a2.shape
    assert jnp.allclose(a2, a2_ref, atol=1e-3, rtol=1e-3), (
        float(jnp.max(jnp.abs(a2 - a2_ref))))
    assert jnp.allclose(lp2, lp2_ref, atol=1e-2, rtol=1e-3), (
        float(jnp.max(jnp.abs(lp2 - lp2_ref))))

    print("KERNEL_OK")
</pallas_src>

<mosaic_0001>
module attributes {stable_mosaic.version = 11 : i64} {
  func.func @_actor_kernel(%arg0: i32, %arg1: memref<8x12xf32, #tpu.memory_space<vmem>>, %arg2: memref<8x128xf32, #tpu.memory_space<vmem>>, %arg3: memref<12x32xf32, #tpu.memory_space<vmem>>, %arg4: memref<1x32xf32, #tpu.memory_space<vmem>>, %arg5: memref<32x32xf32, #tpu.memory_space<vmem>>, %arg6: memref<1x32xf32, #tpu.memory_space<vmem>>, %arg7: memref<32x32xf32, #tpu.memory_space<vmem>>, %arg8: memref<1x32xf32, #tpu.memory_space<vmem>>, %arg9: memref<32x256xf32, #tpu.memory_space<vmem>>, %arg10: memref<1x256xf32, #tpu.memory_space<vmem>>, %arg11: memref<8x128xf32, #tpu.memory_space<vmem>>) attributes {dimension_semantics = [#tpu.dimension_semantics<parallel>], iteration_bounds = array<i64: 1>, scalar_prefetch = 0 : i64, scratch_operands = 0 : i64, tpu.core_type = #tpu.core_type<tc>, window_params = [{transform_indices = @transform_0, window_bounds = array<i64: 8, 12>}, {transform_indices = @transform_1, window_bounds = array<i64: 8, 128>}, {pipeline_mode = #tpu.pipeline_mode<synchronous>, transform_indices = @transform_2, window_bounds = array<i64: 12, 32>}, {pipeline_mode = #tpu.pipeline_mode<synchronous>, transform_indices = @transform_3, window_bounds = array<i64: 1, 32>}, {pipeline_mode = #tpu.pipeline_mode<synchronous>, transform_indices = @transform_4, window_bounds = array<i64: 32, 32>}, {pipeline_mode = #tpu.pipeline_mode<synchronous>, transform_indices = @transform_5, window_bounds = array<i64: 1, 32>}, {pipeline_mode = #tpu.pipeline_mode<synchronous>, transform_indices = @transform_6, window_bounds = array<i64: 32, 32>}, {pipeline_mode = #tpu.pipeline_mode<synchronous>, transform_indices = @transform_7, window_bounds = array<i64: 1, 32>}, {pipeline_mode = #tpu.pipeline_mode<synchronous>, transform_indices = @transform_8, window_bounds = array<i64: 32, 256>}, {pipeline_mode = #tpu.pipeline_mode<synchronous>, transform_indices = @transform_9, window_bounds = array<i64: 1, 256>}, {transform_indices = @transform_10, window_bounds = array<i64: 8, 128>}]} {
    %c0 = arith.constant 0 : index
    %c0_0 = arith.constant 0 : index
    %0 = vector.load %arg1[%c0, %c0_0] : memref<8x12xf32, #tpu.memory_space<vmem>>, vector<8x12xf32>
    %c0_1 = arith.constant 0 : index
    %c0_2 = arith.constant 0 : index
    %1 = vector.load %arg3[%c0_1, %c0_2] : memref<12x32xf32, #tpu.memory_space<vmem>>, vector<12x32xf32>
    %cst = arith.constant dense<0.000000e+00> : vector<8x32xf32>
    %2 = tpu.matmul %0, %1, %cst {dimension_numbers = #tpu.dot_dimension_numbers<[1], [0], [0], [1], [0, 0, 1, 1], [], []>} : vector<8x12xf32>, vector<12x32xf32>, vector<8x32xf32> -> vector<8x32xf32>
    %c0_3 = arith.constant 0 : index
    %c0_4 = arith.constant 0 : index
    %3 = vector.load %arg4[%c0_3, %c0_4] : memref<1x32xf32, #tpu.memory_space<vmem>>, vector<1x32xf32>
    %4 = vector.broadcast %3 : vector<1x32xf32> to vector<8x32xf32>
    %5 = arith.addf %2, %4 : vector<8x32xf32>
    %cst_5 = arith.constant 0.000000e+00 : f32
    %6 = vector.broadcast %cst_5 : f32 to vector<8x32xf32>
    %7 = arith.maximumf %5, %6 : vector<8x32xf32>
    %c0_6 = arith.constant 0 : index
    %c0_7 = arith.constant 0 : index
    %8 = vector.load %arg5[%c0_6, %c0_7] : memref<32x32xf32, #tpu.memory_space<vmem>>, vector<32x32xf32>
    %cst_8 = arith.constant dense<0.000000e+00> : vector<8x32xf32>
    %9 = tpu.matmul %7, %8, %cst_8 {dimension_numbers = #tpu.dot_dimension_numbers<[1], [0], [0], [1], [0, 0, 1, 1], [], []>} : vector<8x32xf32>, vector<32x32xf32>, vector<8x32xf32> -> vector<8x32xf32>
    %c0_9 = arith.constant 0 : index
    %c0_10 = arith.constant 0 : index
    %10 = vector.load %arg6[%c0_9, %c0_10] : memref<1x32xf32, #tpu.memory_space<vmem>>, vector<1x32xf32>
    %11 = vector.broadcast %10 : vector<1x32xf32> to vector<8x32xf32>
    %12 = arith.addf %9, %11 : vector<8x32xf32>
    %cst_11 = arith.constant 0.000000e+00 : f32
    %13 = vector.broadcast %cst_11 : f32 to vector<8x32xf32>
    %14 = arith.maximumf %12, %13 : vector<8x32xf32>
    %c0_12 = arith.constant 0 : index
    %c0_13 = arith.constant 0 : index
    %15 = vector.load %arg7[%c0_12, %c0_13] : memref<32x32xf32, #tpu.memory_space<vmem>>, vector<32x32xf32>
    %cst_14 = arith.constant dense<0.000000e+00> : vector<8x32xf32>
    %16 = tpu.matmul %14, %15, %cst_14 {dimension_numbers = #tpu.dot_dimension_numbers<[1], [0], [0], [1], [0, 0, 1, 1], [], []>} : vector<8x32xf32>, vector<32x32xf32>, vector<8x32xf32> -> vector<8x32xf32>
    %c0_15 = arith.constant 0 : index
    %c0_16 = arith.constant 0 : index
    %17 = vector.load %arg8[%c0_15, %c0_16] : memref<1x32xf32, #tpu.memory_space<vmem>>, vector<1x32xf32>
    %18 = vector.broadcast %17 : vector<1x32xf32> to vector<8x32xf32>
    %19 = arith.addf %16, %18 : vector<8x32xf32>
    %cst_17 = arith.constant 0.000000e+00 : f32
    %20 = vector.broadcast %cst_17 : f32 to vector<8x32xf32>
    %21 = arith.maximumf %19, %20 : vector<8x32xf32>
    %c0_18 = arith.constant 0 : index
    %c0_19 = arith.constant 0 : index
    %22 = vector.load %arg9[%c0_18, %c0_19] : memref<32x256xf32, #tpu.memory_space<vmem>>, vector<32x256xf32>
    %cst_20 = arith.constant dense<0.000000e+00> : vector<8x256xf32>
    %23 = tpu.matmul %21, %22, %cst_20 {dimension_numbers = #tpu.dot_dimension_numbers<[1], [0], [0], [1], [0, 0, 1, 1], [], []>} : vector<8x32xf32>, vector<32x256xf32>, vector<8x256xf32> -> vector<8x256xf32>
    %c0_21 = arith.constant 0 : index
    %c0_22 = arith.constant 0 : index
    %24 = vector.load %arg10[%c0_21, %c0_22] : memref<1x256xf32, #tpu.memory_space<vmem>>, vector<1x256xf32>
    %25 = vector.broadcast %24 : vector<1x256xf32> to vector<8x256xf32>
    %26 = arith.addf %23, %25 : vector<8x256xf32>
    %27 = vector.extract_strided_slice %26 {offsets = [0, 0], sizes = [8, 128], strides = [1, 1]} : vector<8x256xf32> to vector<8x128xf32>
    %28 = vector.extract_strided_slice %26 {offsets = [0, 128], sizes = [8, 128], strides = [1, 1]} : vector<8x256xf32> to vector<8x128xf32>
    %cst_23 = arith.constant -5.000000e+00 : f32
    %cst_24 = arith.constant 2.000000e+00 : f32
    %29 = vector.broadcast %cst_23 : f32 to vector<8x128xf32>
    %30 = arith.maximumf %29, %28 : vector<8x128xf32>
    %31 = vector.broadcast %cst_24 : f32 to vector<8x128xf32>
    %32 = arith.minimumf %31, %30 : vector<8x128xf32>
    %c0_25 = arith.constant 0 : index
    %c0_26 = arith.constant 0 : index
    %33 = vector.load %arg2[%c0_25, %c0_26] : memref<8x128xf32, #tpu.memory_space<vmem>>, vector<8x128xf32>
    %34 = math.exp %32 : vector<8x128xf32>
    %35 = arith.mulf %34, %33 : vector<8x128xf32>
    %36 = arith.addf %27, %35 : vector<8x128xf32>
    %37 = math.tanh %36 : vector<8x128xf32>
    %cst_27 = arith.constant 1.000000e+00 : f32
    %38 = vector.broadcast %cst_27 : f32 to vector<8x128xf32>
    %39 = arith.mulf %37, %38 : vector<8x128xf32>
    %cst_28 = arith.constant 0.000000e+00 : f32
    %40 = vector.broadcast %cst_28 : f32 to vector<8x128xf32>
    %41 = arith.subf %40, %32 : vector<8x128xf32>
    %cst_29 = arith.constant 0.918938517 : f32
    %42 = vector.broadcast %cst_29 : f32 to vector<8x128xf32>
    %43 = arith.subf %41, %42 : vector<8x128xf32>
    %44 = arith.mulf %33, %33 : vector<8x128xf32>
    %cst_30 = arith.constant 5.000000e-01 : f32
    %45 = vector.broadcast %cst_30 : f32 to vector<8x128xf32>
    %46 = arith.mulf %45, %44 : vector<8x128xf32>
    %47 = arith.subf %43, %46 : vector<8x128xf32>
    %48 = arith.mulf %37, %37 : vector<8x128xf32>
    %cst_31 = arith.constant 1.000000e+00 : f32
    %49 = vector.broadcast %cst_31 : f32 to vector<8x128xf32>
    %50 = arith.subf %49, %48 : vector<8x128xf32>
    %cst_32 = arith.constant 9.99999997E-7 : f32
    %51 = vector.broadcast %cst_32 : f32 to vector<8x128xf32>
    %52 = arith.addf %50, %51 : vector<8x128xf32>
    %53 = math.log %52 : vector<8x128xf32>
    %54 = arith.subf %47, %53 : vector<8x128xf32>
    %55 = tpu.iota {dimensions = array<i32: 1>} : vector<8x128xi32>
    %c6_i32 = arith.constant 6 : i32
    %56 = vector.broadcast %c6_i32 : i32 to vector<8x128xi32>
    %57 = arith.cmpi slt, %55, %56 : vector<8x128xi32>
    %cst_33 = arith.constant 0.000000e+00 : f32
    %58 = vector.broadcast %cst_33 : f32 to vector<8x128xf32>
    %59 = arith.select %57, %54, %58 : vector<8x128xi1>, vector<8x128xf32>
    %cst_34 = arith.constant dense<0.000000e+00> : vector<8xf32>
    %60 = vector.multi_reduction <add>, %59, %cst_34 [1] : vector<8x128xf32> to vector<8xf32>
    %61 = vector.shape_cast %60 : vector<8xf32> to vector<8x1xf32>
    %62 = vector.shape_cast %61 : vector<8x1xf32> to vector<8x1xf32>
    %63 = vector.broadcast %62 : vector<8x1xf32> to vector<8x128xf32>
    %64 = arith.select %57, %39, %63 : vector<8x128xi1>, vector<8x128xf32>
    %c0_35 = arith.constant 0 : index
    %c0_36 = arith.constant 0 : index
    %65 = vector.load %arg11[%c0_35, %c0_36] : memref<8x128xf32, #tpu.memory_space<vmem>>, vector<8x128xf32>
    tpu.vector_store %arg11[%c0_35, %c0_36], %64 {strides = array<i32>} : memref<8x128xf32, #tpu.memory_space<vmem>>, vector<8x128xf32>,
    return
  }
  func.func @transform_0(%arg0: i32) -> (i32, i32) {
    %c0_i32 = arith.constant 0 : i32
    %c0_i32_0 = arith.constant 0 : i32
    return %arg0, %c0_i32 : i32, i32
  }
  func.func @transform_1(%arg0: i32) -> (i32, i32) {
    %c0_i32 = arith.constant 0 : i32
    %c0_i32_0 = arith.constant 0 : i32
    return %arg0, %c0_i32 : i32, i32
  }
  func.func @transform_2(%arg0: i32) -> (i32, i32) {
    %c0_i32 = arith.constant 0 : i32
    %c0_i32_0 = arith.constant 0 : i32
    %c0_i32_1 = arith.constant 0 : i32
    return %c0_i32, %c0_i32_0 : i32, i32
  }
  func.func @transform_3(%arg0: i32) -> (i32, i32) {
    %c0_i32 = arith.constant 0 : i32
    %c0_i32_0 = arith.constant 0 : i32
    %c0_i32_1 = arith.constant 0 : i32
    return %c0_i32, %c0_i32_0 : i32, i32
  }
  func.func @transform_4(%arg0: i32) -> (i32, i32) {
    %c0_i32 = arith.constant 0 : i32
    %c0_i32_0 = arith.constant 0 : i32
    %c0_i32_1 = arith.constant 0 : i32
    return %c0_i32, %c0_i32_0 : i32, i32
  }
  func.func @transform_5(%arg0: i32) -> (i32, i32) {
    %c0_i32 = arith.constant 0 : i32
    %c0_i32_0 = arith.constant 0 : i32
    %c0_i32_1 = arith.constant 0 : i32
    return %c0_i32, %c0_i32_0 : i32, i32
  }
  func.func @transform_6(%arg0: i32) -> (i32, i32) {
    %c0_i32 = arith.constant 0 : i32
    %c0_i32_0 = arith.constant 0 : i32
    %c0_i32_1 = arith.constant 0 : i32
    return %c0_i32, %c0_i32_0 : i32, i32
  }
  func.func @transform_7(%arg0: i32) -> (i32, i32) {
    %c0_i32 = arith.constant 0 : i32
    %c0_i32_0 = arith.constant 0 : i32
    %c0_i32_1 = arith.constant 0 : i32
    return %c0_i32, %c0_i32_0 : i32, i32
  }
  func.func @transform_8(%arg0: i32) -> (i32, i32) {
    %c0_i32 = arith.constant 0 : i32
    %c0_i32_0 = arith.constant 0 : i32
    %c0_i32_1 = arith.constant 0 : i32
    return %c0_i32, %c0_i32_0 : i32, i32
  }
  func.func @transform_9(%arg0: i32) -> (i32, i32) {
    %c0_i32 = arith.constant 0 : i32
    %c0_i32_0 = arith.constant 0 : i32
    %c0_i32_1 = arith.constant 0 : i32
    return %c0_i32, %c0_i32_0 : i32, i32
  }
  func.func @transform_10(%arg0: i32) -> (i32, i32) {
    %c0_i32 = arith.constant 0 : i32
    %c0_i32_0 = arith.constant 0 : i32
    return %arg0, %c0_i32 : i32, i32
  }
}

</mosaic_0001>

<bundles_post_ra>
// kernel: tpu_custom_call.1
= control target key start
LH: loop header
LB: loop body
LE: loop exit
PB: predicated region body
PF: predicated region fallthrough
CT: control target
= control target key end

     0   :  { %15 = vsyncpa [#allocation3], 0  ;;  %s849_s0 = inlined_call_operand.hbm [shape: f32[8,12], index: 0, kind: input, shape index: {}]   ;;  %s850_s1 = inlined_call_operand.hbm [shape: f32[8,128], index: 1, kind: input, shape index: {}]   ;;  %s851_s2 = inlined_call_operand.hbm [shape: f32[12,32], index: 2, kind: input, shape index: {}]   ;;  %s852_s3 = inlined_call_operand.vmem [shape: f32[1,32], index: 3, kind: input, shape index: {}]   ;;  %s853_s4 = inlined_call_operand.hbm [shape: f32[32,32], index: 4, kind: input, shape index: {}]   ;;  %s854_s5 = inlined_call_operand.vmem [shape: f32[1,32], index: 5, kind: input, shape index: {}]   ;;  %s855_s6 = inlined_call_operand.hbm [shape: f32[32,32], index: 6, kind: input, shape index: {}]   ;;  %s856_s7 = inlined_call_operand.vmem [shape: f32[1,32], index: 7, kind: input, shape index: {}]   ;;  %s857_s8 = inlined_call_operand.hbm [shape: f32[32,256], index: 8, kind: input, shape index: {}]   ;;  %s858_s9 = inlined_call_operand.vmem [shape: f32[1,256], index: 9, kind: input, shape index: {}]   ;;  %s859_s10 = inlined_call_operand.hbm [shape: f32[8,128], index: 10, kind: output, shape index: {}]  }
   0x1   :  { %16 = vsyncpa [#allocation6], 0 }
   0x2   :  { %17 = vsyncpa [#allocation9], 0 }
   0x3   :  { %18 = vsyncpa [#allocation12], 0 }
   0x4   :  { %19 = vsyncpa [#allocation4], 0  ;;  %s733_s13 = smov [#allocation5]  }
   0x5   :  { %s36_s14 = sshll.u32 %s733_s13, 4  ;;  %s37_s14 = int_to_ptr.vmem [resolvable:$true] %s36_s14 }
   0x6   :  { %s591_s15 = scalar_lea.vmem %s37_s14, 128  ;;  %p596_p1 = scmp.lt.s32.totalorder %s37_s14, %s37_s14 }
   0x7   :  { %p592_p0 = scmp.ne.s32.totalorder %s37_s14, %s591_s15  ;;  %p597_p2 = scmp.lt.s32.totalorder %s591_s15, %s591_s15 }
   0x9   :  { %p598_p3 = por %p597_p2, %p596_p1 }
   0xb   :  { %p599_p4 = pnand %p598_p3, %p592_p0 }
   0xd   :  { %602 = shalt.err (!%p599_p4)
}
   0xe   :  { %39 = dma.hbm_to_vmem [thread:$0]  %s850_s1, 128, %s37_s14, [#allocation6]  }
   0xf   :  { %s734_s18 = smov [#allocation8]   ;;  %s735_s20 = smov [#allocation2]  }
  0x10   :  { %s59_s19 = sshll.u32 %s734_s18, 4  ;;  %s26_s21 = sshll.u32 %s735_s20, 4  ;;  %s60_s19 = int_to_ptr.vmem [resolvable:$true] %s59_s19  ;;  %s27_s21 = int_to_ptr.vmem [resolvable:$true] %s26_s21 }
  0x11   :  { %s611_s22 = scalar_lea.vmem %s60_s19, 512  ;;  %p616_p6 = scmp.lt.s32.totalorder %s60_s19, %s60_s19 }
  0x12   :  { %p612_p5 = scmp.ne.s32.totalorder %s60_s19, %s611_s22  ;;  %p617_p7 = scmp.lt.s32.totalorder %s611_s22, %s611_s22 }
  0x14   :  { %p618_p8 = por %p617_p7, %p616_p6 }
  0x16   :  { %p619_p9 = pnand %p618_p8, %p612_p5 }
  0x18   :  { %622 = shalt.err (!%p619_p9)
}
  0x19   :  { %s736_s23 = smov 128   ;;  %s737_s24 = smov 8  }
  0x1a   :  { %65 = dma.hbm_to_vmem [thread:$0]  %s853_s4, 512, %s60_s19, [#allocation9], %s736_s23, %s736_s23, %s737_s24  }
  0x1b   :  { %s631_s1 = scalar_lea.vmem %s27_s21, 128  ;;  %p636_p11 = scmp.lt.s32.totalorder %s27_s21, %s27_s21 }
  0x1c   :  { %p632_p10 = scmp.ne.s32.totalorder %s27_s21, %s631_s1  ;;  %p637_p12 = scmp.lt.s32.totalorder %s631_s1, %s631_s1 }
  0x1e   :  { %p638_p13 = por %p637_p12, %p636_p11 }
  0x20   :  { %p639_p0 = pnand %p638_p13, %p632_p10 }
  0x22   :  { %642 = shalt.err (!%p639_p0)
}
  0x23   :  { %29 = dma.hbm_to_vmem [thread:$0]  %s849_s0, 128, %s27_s21, [#allocation3]  }
  0x24   :  { %s738_s29 = smov [#allocation7]   ;;  %s739_s11 = smov [#allocation10]  }
  0x25   :  { %s45_s30 = sshll.u32 %s738_s29, 4  ;;  %s73_s12 = sshll.u32 %s739_s11, 4  ;;  %s46_s30 = int_to_ptr.vmem [resolvable:$true] %s45_s30  ;;  %s74_s12 = int_to_ptr.vmem [resolvable:$true] %s73_s12 }
  0x26   :  { %s651_s13 = scalar_lea.vmem %s46_s30, 256  ;;  %p656_p2 = scmp.lt.s32.totalorder %s46_s30, %s46_s30 }
  0x27   :  { %p652_p1 = scmp.ne.s32.totalorder %s46_s30, %s651_s13  ;;  %p657_p3 = scmp.lt.s32.totalorder %s651_s13, %s651_s13 }
  0x29   :  { %p658_p4 = por %p657_p3, %p656_p2 }
  0x2b   :  { %p659_p5 = pnand %p658_p4, %p652_p1 }
  0x2d   :  { %662 = shalt.err (!%p659_p5)
}
  0x2e   :  { %51 = dma.hbm_to_vmem [thread:$0]  %s851_s2, 256, %s46_s30, [#allocation6], %s736_s23, %s736_s23, %s737_s24  }
  0x2f   :  { %s671_s0 = scalar_lea.vmem %s74_s12, 512  ;;  %p676_p7 = scmp.lt.s32.totalorder %s74_s12, %s74_s12 }
  0x30   :  { %p672_p6 = scmp.ne.s32.totalorder %s74_s12, %s671_s0  ;;  %p677_p8 = scmp.lt.s32.totalorder %s671_s0, %s671_s0 }
  0x32   :  { %p678_p9 = por %p677_p8, %p676_p7 }
  0x34   :  { %p679_p10 = pnand %p678_p9, %p672_p6 }
  0x36   :  { %682 = shalt.err (!%p679_p10)
}
  0x37   :  { %79 = dma.hbm_to_vmem [thread:$0]  %s855_s6, 512, %s74_s12, [#allocation9], %s736_s23, %s736_s23, %s737_s24  }
  0x38   :  { %s740_s17 = smov [#allocation11]  }
  0x39   :  { %s87_s18 = sshll.u32 %s740_s17, 4  ;;  %s88_s18 = int_to_ptr.vmem [resolvable:$true] %s87_s18 }
  0x3a   :  { %s691_s19 = scalar_lea.vmem %s88_s18, 1024  ;;  %p696_p12 = scmp.lt.s32.totalorder %s88_s18, %s88_s18 }
  0x3b   :  { %p692_p11 = scmp.ne.s32.totalorder %s88_s18, %s691_s19  ;;  %p697_p13 = scmp.lt.s32.totalorder %s691_s19, %s691_s19 }
  0x3d   :  { %p698_p0 = por %p697_p13, %p696_p12 }
  0x3f   :  { %p699_p1 = pnand %p698_p0, %p692_p11 }
  0x41   :  { %702 = shalt.err (!%p699_p1)
}
  0x42   :  { %s741_s2 = smov 256   ;;  %s742_s20 = smov 16  }
  0x43   :  { %93 = dma.hbm_to_vmem [thread:$0]  %s857_s8, 1024, %s88_s18, [#allocation12], %s741_s2, %s741_s2, %s742_s20  }
  0x44   :  { %723 = dma.done.wait [#allocation3], 128  }
  0x45   :  { %724 = vsyncadd [#allocation3], 4294967168 }
  0x46   :  { %725 = dma.done.wait [#allocation6], 384  }
  0x47   :  { %726 = vsyncadd [#allocation6], 4294966912 }
  0x48   :  { %727 = dma.done.wait [#allocation9], 1024  }
  0x49   :  { %728 = vsyncadd [#allocation9], 4294966272 }
  0x4a   :  { %729 = dma.done.wait [#allocation12], 1024  }
  0x4b   :  { %730 = vsyncadd [#allocation12], 4294966272  ;;  %v743_v0 = vmov 0.0   ;;  %vm744_vm0 = vmmov 0   ;;  %vm128_vm1 = vcmask 1043456   ;;  %v115_v2 = vld [vmem:[#allocation7] sm:$0xff]  ;;  %v384_v35 = vlaneseq }
  0x4c   :  { %535 = vmatprep.subr.mxu0 %v743_v0  ;;  %539 = vmatprep.mubr.msk.f32.mxu0 %vm744_vm0, %v743_v0  ;;  %v116_v1 = vld [vmem:[#allocation7 + $0x8] sm:$0xf]  ;;  %v114_v3 = vld [vmem:[#allocation2] sm:$0xff]  ;;  %vm124_vm2 = vcmask 97280   ;;  %v205_v5 = vld [vmem:[#allocation8 + $0x10] sm:$0xff]  ;;  %vm214_vm3 = vcmask 261120  }
  0x4d   :  { %542 = vmatprep.subr.mxu1 %v743_v0  ;;  %550 = vmatprep.mubr.msk.f32.mxu1 %vm744_vm0, %v743_v0  ;;  %v206_v4 = vld [vmem:[#allocation8 + $0x18] sm:$0xff]  ;;  %v204_v6 = vld [vmem:[#allocation8 + $0x8] sm:$0xff]  ;;  %v203_v7 = vld [vmem:[#allocation8] sm:$0xff]  ;;  %v385_v36 = vshrl.u32 %v384_v35, 7  ;;  %v488_v61 = vand.u32 127, %v384_v35 }
  0x4e   :  { %536 = vmatpush3.msk.msra.mxu0 %vm128_vm1, %v116_v1  ;;  %543 = vmatpush3.msra.mxu1 %v206_v4  ;;  %v292_v8 = vld [vmem:[#allocation10 + $0x18] sm:$0xff]  ;;  %v513_v9 = vld [vmem:[%s852_s3] ss:$0 sm:$0xff]  ;;  %v291_v14 = vld [vmem:[#allocation10 + $0x10] sm:$0xff] }
  0x4f   :  { %537 = vmatprep.subr.mxu0 %v743_v0  ;;  %544 = vmatprep.subr.mxu1 %v743_v0  ;;  %v290_v15 = vld [vmem:[#allocation10 + $0x8] sm:$0xff]  ;;  %v289_v16 = vld [vmem:[#allocation10] sm:$0xff]  ;;  %v381_v17 = vld [vmem:[#allocation11 + $0x38] sm:$0xff]  ;;  %v390_v37 = vsub.s32 1, %v385_v36  ;;  %v386_v46 = vsub.s32 0, %v385_v36  ;;  %vm489_vm4 = vcmp.lt.s32.totalorder %v488_v61, 6 }
  0x50   :  { %538 = vmatpush3.msra.mxu0 %v115_v2  ;;  %545 = vmatpush3.msra.mxu1 %v205_v5  ;;  %v380_v18 = vld [vmem:[#allocation11 + $0x30] sm:$0xff]  ;;  %v379_v19 = vld [vmem:[#allocation11 + $0x28] sm:$0xff]  ;;  %v516_v20 = vld [vmem:[%s854_s5] ss:$0 sm:$0xff] }
  0x51   :  { %540 = vmatmul.mubr.msk.f32.vlgmr.msra.gmra.mxu0 %vm124_vm2, %v114_v3  ;;  %553 = vmatprep.subr.mxu0 %v743_v0  ;;  %v378_v25 = vld [vmem:[#allocation11 + $0x20] sm:$0xff]  ;;  %v377_v26 = vld [vmem:[#allocation11 + $0x18] sm:$0xff]  ;;  %v376_v27 = vld [vmem:[#allocation11 + $0x10] sm:$0xff] }
  0x52   :  { %561 = vmatprep.mubr.msk.f32.mxu0 %vm744_vm0, %v743_v0  ;;  %546 = vmatprep.subr.mxu1 %v743_v0  ;;  %v375_v28 = vld [vmem:[#allocation11 + $0x8] sm:$0xff]  ;;  %v374_v29 = vld [vmem:[#allocation11] sm:$0xff] }
  0x53   :  { %547 = vmatpush3.msra.mxu1 %v204_v6  ;;  %554 = vmatpush3.msra.mxu0 %v292_v8  ;;  %v518_v30 = vld [vmem:[%s856_s7] ss:$0 sm:$0xff]  ;;  %v470_v49 = vld [vmem:[#allocation5] sm:$0xff]  ;;  %s745_s7 = smov [#allocation13]  }
  0x54   :  { %548 = vmatprep.subr.mxu1 %v743_v0  ;;  %555 = vmatprep.subr.mxu0 %v743_v0  ;;  %v382_v38 = vld [vmem:[%s858_s9] sm:$0x3]  ;;  %v478_v58 = vmul.f32 %v470_v49, %v470_v49  ;;  %s501_s9 = sshll.u32 %s745_s7, 4  ;;  %s502_s9 = int_to_ptr.vmem [resolvable:$true] %s501_s9 }
  0x55   :  { %549 = vmatpush3.msra.mxu1 %v203_v7  ;;  %556 = vmatpush3.msra.mxu0 %v291_v14  ;;  %v391_v39 = vrot.slane %v382_v38, %v390_v37  ;;  %v387_v47 = vrot.slane %v382_v38, %v386_v46  ;;  %s703_s1 = scalar_lea.vmem %s502_s9, 128  ;;  %p708_p3 = scmp.lt.s32.totalorder %s502_s9, %s502_s9 }
  0x56   :  { %557 = vmatprep.subr.mxu0 %v743_v0  ;;  %421 = vmatprep.subr.mxu1 %v381_v17  ;;  %v479_v60 = vmul.f32 0.5, %v478_v58  ;;  %p704_p2 = scmp.ne.s32.totalorder %s502_s9, %s703_s1  ;;  %p709_p4 = scmp.lt.s32.totalorder %s703_s1, %s703_s1 }
  0x57   :  { %558 = vmatpush3.msra.mxu0 %v290_v15 }
  0x58   :  { %559 = vmatprep.subr.mxu0 %v743_v0  ;;  %p710_p5 = por %p709_p4, %p708_p3 }
  0x59   :  { %560 = vmatpush3.msra.mxu0 %v289_v16 }
  0x5a   :  { %p711_p6 = pnand %p710_p5, %p704_p2 }
 0x111   :  { %v198_v10 = vpop.f32.mrf.mxu0 }
 0x112   :  { %v199_v11 = vadd.f32 %v513_v9, %v198_v10 }
 0x113   :  { %v541_v12 = vpop.f32.mrf.mxu0 }
 0x114   :  { %v202_v13 = vmax.f32 %v199_v11, 0.0 }
 0x116   :  { %551 = vmatmul.mubr.msk.f32.vlgmr.msra.gmra.mxu1 %vm214_vm3, %v202_v13 }
 0x117   :  { %461 = vmatprep.mubr.f32.mxu1 %v743_v0  ;;  %422 = vmatpush1.msra.mxu1 %v380_v18 }
 0x118   :  { %423 = vmatprep.subr.mxu1 %v379_v19 }
 0x119   :  { %424 = vmatpush1.msra.mxu1 %v378_v25 }
 0x11a   :  { %425 = vmatprep.subr.mxu1 %v377_v26 }
 0x11b   :  { %426 = vmatpush1.msra.mxu1 %v376_v27 }
 0x11c   :  { %427 = vmatprep.subr.mxu1 %v375_v28 }
 0x11d   :  { %428 = vmatpush1.msra.mxu1 %v374_v29 }
 0x1d6   :  { %v284_v21 = vpop.f32.mrf.mxu1 }
 0x1d7   :  { %v285_v22 = vadd.f32 %v516_v20, %v284_v21 }
 0x1d8   :  { %v552_v23 = vpop.f32.mrf.mxu1 }
 0x1d9   :  { %v288_v24 = vmax.f32 %v285_v22, 0.0 }
 0x1db   :  { %562 = vmatmul.mubr.msk.f32.vlgmr.msra.gmra.mxu0 %vm214_vm3, %v288_v24 }
 0x29b   :  { %v369_v31 = vpop.f32.mrf.mxu0 }
 0x29c   :  { %v370_v32 = vadd.f32 %v518_v30, %v369_v31 }
 0x29d   :  { %v563_v33 = vpop.f32.mrf.mxu0 }
 0x29e   :  { %v373_v34 = vmax.f32 %v370_v32, 0.0 }
 0x2a0   :  { %520 = vmatmul.mubr.msk.f32.vlgmr.msra.gmra.mxu1 %vm214_vm3, %v373_v34 }
 0x360   :  { %v463_v40 = vpop.f32.mrf.mxu1 }
 0x361   :  { %v464_v50 = vadd.f32 %v463_v40, %v387_v47 }
 0x362   :  { %v465_v41 = vpop.f32.mrf.mxu1 }
 0x363   :  { %v466_v42 = vadd.f32 %v465_v41, %v391_v39 }
 0x365   :  { %v468_v43 = vmax.f32 %v466_v42, -5.0 }
 0x367   :  { %v469_v44 = vmin.f32 %v468_v43, 2.0 }
 0x369   :  { %v471_v45 = vmul.f32 1.442695, %v469_v44  ;;  %v476_v57 = vsub.f32 0.0, %v469_v44 }
 0x36b   :  { %577 = vpow2.f32 %v471_v45  ;;  %v521_v59 = vadd.f32 -0.9189385, %v476_v57 }
 0x36d   :  { %v480_v63 = vsub.f32 %v521_v59, %v479_v60 }
 0x378   :  { %v578_v48 = vpop.eup %577 }
 0x379   :  { %v473_v51 = vmul.f32 %v578_v48, %v470_v49 }
 0x37b   :  { %v474_v52 = vadd.f32 %v473_v51, %v464_v50 }
 0x37d   :  { %579 = vtanh.f32 %v474_v52 }
 0x38a   :  { %v580_v53 = vpop.eup %579 }
 0x38b   :  { %v481_v54 = vmul.f32 %v580_v53, %v580_v53 }
 0x38d   :  { %v482_v55 = vsub.f32 1.0, %v481_v54 }
 0x38f   :  { %v483_v56 = vadd.f32 1e-06, %v482_v55 }
 0x391   :  { %581 = vlog2.f32 %v483_v56 }
 0x39e   :  { %v582_v62 = vpop.eup %581 }
 0x39f   :  { %v485_v0 = vmul.f32 0.6931472, %v582_v62 }
 0x3a1   :  { %v486_v1 = vsub.f32 %v480_v63, %v485_v0 }
 0x3a3   :  { %v490_v2 = vsel %vm489_vm4, %v486_v1, 0.0 }
 0x3a4   :  { %491 = vadd.xlane.f32.xlu0 %v490_v2 }
 0x42d   :  { %v492_v3 = vpop.xlane.xlu0 %491 }
 0x42e   :  { %v493_v4 = vsel %vm489_vm4, %v580_v53, %v492_v3 }
 0x42f   :  { %494 = vst [vmem:[#allocation13] sm:$0xff] %v493_v4 }
 0x430   :  { %714 = shalt.err (!%p711_p6)
}
 0x431   :  { %504 = dma.vmem_to_hbm [thread:$0]  %s502_s9, 128, %s859_s10, [#allocation4]  }
 0x432   :  { %731 = dma.done.wait [#allocation4], 128  }
 0x433   :  { %732 = vsyncadd [#allocation4], 4294967168 }
 0x434   :  { %508 = vsyncpa [#allocation3], 1 }
 0x435   :  { %509 = vsyncpa [#allocation6], 1 }
 0x436   :  { %510 = vsyncpa [#allocation9], 1 }
 0x437   :  { %511 = vsyncpa [#allocation12], 1 }
 0x438   :  { %512 = vsyncpa [#allocation4], 1 }

</bundles_post_ra>
